<compile_context>
chip_gen: v7x
topology: tpu7x:2x2x1
jax: 0.10.0
libtpu: 0.0.40
codegen_flags: <defaults>
</compile_context>

<pallas_src>
import functools

import jax
import jax.numpy as jnp
from jax.experimental import pallas as pl
from jax.experimental.pallas import tpu as pltpu

_LANE = 128      # lane width
_SUBLANE = 8     # sublane granularity (f32)


def _round_up(x: int, m: int) -> int:
    return (x + m - 1) // m * m


# --------------------------------------------------------------------------- #
# Kernel
# --------------------------------------------------------------------------- #
def _make_kernel(num_layers: int, param_dtype):
    """Kernel closed over the static layer count and weight dtype."""

    def kernel(tactics_ref, *refs):
        # refs = (w0T, b0, w1T, b1, ..., w_outT, b_out, o_ref)
        o_ref = refs[-1]
        p_refs = refs[:-1]

        tb = tactics_ref.shape[1]
        t_pad = p_refs[0].shape[1]                 # lane-padded vocab axis of W0^T

        ids = tactics_ref[...]                     # (1, TB) int32, lane-major
        vocab = jax.lax.broadcasted_iota(jnp.int32, (t_pad, tb), 0)
        # Transposed on-chip one-hot; the MXU contraction below is the W0 row
        # gather.  OOB / negative ids -> all-zero column -> bias-only output.
        one_hot_t = (vocab == ids).astype(param_dtype)        # (T_pad, TB), exact 0/1

        # ---- first layer: W0^T @ one_hot^T + b0, ReLU ----------------------
        w0t = p_refs[0][...]                       # (H_pad, T_pad) bf16
        b0 = p_refs[1][...]                        # (H_pad, 1)     f32
        x = jnp.dot(w0t, one_hot_t, preferred_element_type=jnp.float32) + b0
        x = jnp.maximum(x, 0.0)                    # f32 on the VPU

        # ---- remaining hidden layers ---------------------------------------
        idx = 2
        for _ in range(num_layers - 1):
            wt = p_refs[idx][...]                  # (H_pad, H_pad) bf16
            b = p_refs[idx + 1][...]               # (H_pad, 1)     f32
            idx += 2
            x = jnp.dot(wt, x.astype(param_dtype),
                        preferred_element_type=jnp.float32) + b
            x = jnp.maximum(x, 0.0)

        # ---- output layer: row 0 of (8, H_pad) @ (H_pad, TB) ----------------
        w_out_t = p_refs[idx][...]                 # (8, H_pad) bf16, row 0 real
        b_out = p_refs[idx + 1][...]               # (1, 1)     f32
        out = jnp.dot(w_out_t, x.astype(param_dtype),
                      preferred_element_type=jnp.float32)     # (8, TB) f32
        o_ref[...] = out[0:1, :] + b_out           # (1, TB), every lane real

    return kernel


# --------------------------------------------------------------------------- #
# Parameter packing (once, outside the hot path)
# --------------------------------------------------------------------------- #
def pack_params(params, *, num_tactics, hidden_size, num_layers,
                param_dtype=jnp.bfloat16):
    """Pad / cast / transpose the DNNScorer params ONCE.

    Returns (w0T, b0, w1T, b1, ..., w_outT, b_out):
      * weights transposed to (out_features, in_features), `param_dtype`,
        both axes zero-padded to 128 (padded rows/cols stay exactly 0 through
        ReLU, so semantics are preserved),
      * biases as f32 (H_pad, 1) columns (broadcast over the batch/lane axis),
      * the final Linear(hidden, 1) as row 0 of an (8, H_pad) block plus a
        (1, 1) f32 bias.
    """
    h_pad = _round_up(hidden_size, _LANE)
    # Vocab axis is the lane axis of W0^T and the sublane axis of the bf16
    # one-hot -> pad to 128, which satisfies both (and the bf16 16-row packing).
    t_pad = _round_up(num_tactics, _LANE)

    flat = []
    in_dims = [num_tactics] + [hidden_size] * (num_layers - 1)
    in_pads = [t_pad] + [h_pad] * (num_layers - 1)
    for layer in range(num_layers):
        w, b = params[layer]                       # (in, hidden), (hidden,)
        w_t = jnp.zeros((h_pad, in_pads[layer]), param_dtype)
        w_t = w_t.at[:hidden_size, :in_dims[layer]].set(
            jnp.asarray(w, jnp.float32).T.astype(param_dtype))
        b_p = jnp.zeros((h_pad, 1), jnp.float32)
        b_p = b_p.at[:hidden_size, 0].set(jnp.asarray(b, jnp.float32))
        flat += [w_t, b_p]

    w_out, b_out = params[-1]                      # (hidden, 1), (1,)
    w_out_t = jnp.zeros((_SUBLANE, h_pad), param_dtype)
    w_out_t = w_out_t.at[0, :hidden_size].set(
        jnp.asarray(w_out, jnp.float32)[:, 0].astype(param_dtype))
    b_out_p = jnp.asarray(b_out, jnp.float32).reshape(1, 1)
    flat += [w_out_t, b_out_p]
    return tuple(flat)


# --------------------------------------------------------------------------- #
# Wrapper
# --------------------------------------------------------------------------- #
def _choose_batch_tile(batch: int, batch_tile: int):
    """Pick (tile, padded_batch).  Multi-tile => tile is a multiple of 128 (it
    blocks the lane axis); large batches split into >= 2 tiles so v7x's second
    TensorCore has work."""
    batch_tile = max(_LANE, _round_up(batch_tile, _LANE))
    if batch <= _LANE:
        tb = _round_up(max(batch, 1), _SUBLANE)          # single small tile
    else:
        half = _round_up(-(-batch // 2), _LANE)          # ceil(batch/2), 128-aligned
        tb = min(batch_tile, half)
    b_pad = _round_up(batch, tb)
    return tb, b_pad


def _resident_spec(shape):
    """Constant-index, single-buffered BlockSpec for VMEM-resident params."""
    index_map = lambda i: (0,) * len(shape)
    try:
        return pl.BlockSpec(shape, index_map, pipeline_mode=pl.Buffered(1))
    except (TypeError, AttributeError):
        # Older jax without pipeline_mode: fall back to default double buffering.
        return pl.BlockSpec(shape, index_map)


def _vmem_limit_bytes(packed_params, tb, h_pad, t_pad, weights_single_buffered):
    wf = 1 if weights_single_buffered else 2             # weight buffering factor
    weight_bytes = wf * sum(int(p.size) * p.dtype.itemsize for p in packed_params)
    io_bytes = 2 * (tb * 4 + tb * 4)                      # double-buffered ids + out rows
    act_bytes = 2 * h_pad * tb * 4 + t_pad * tb * 2 + _SUBLANE * tb * 4
    needed = weight_bytes + io_bytes + act_bytes + (4 << 20)
    try:
        cap = int(pltpu.get_tpu_info().vmem_capacity_bytes)   # 64 MiB v7x, 128 MiB v5e/v6e
    except Exception:
        cap = 64 << 20                                     # conservative fallback (v7x)
    return max(16 << 20, min(needed, int(cap * 0.85)))


def simplified_q_model_forward(tactics_batch, packed_params, *, num_tactics,
                               hidden_size, num_layers, batch_tile=1024):
    """JAX wrapper: pad batch, launch one batch-tiled pallas_call, slice result."""
    batch = tactics_batch.shape[0]
    h_pad = _round_up(hidden_size, _LANE)
    t_pad = packed_params[0].shape[1]

    tb, b_pad = _choose_batch_tile(batch, batch_tile)
    num_tiles = b_pad // tb

    # NOTE: int64 ids are truncated to int32 (tactic vocabularies << 2^31).
    # OOB / negative ids produce a bias-only output instead of raising like
    # torch.nn.functional.one_hot.
    t32 = tactics_batch.astype(jnp.int32).reshape(1, batch)   # lane-major row
    t32 = jnp.pad(t32, ((0, 0), (0, b_pad - batch)))          # pad lanes use id 0

    kernel = _make_kernel(num_layers, packed_params[0].dtype)

    # Tiled tactic ids / output (lane-axis blocking); weights & biases get
    # constant index_maps + single buffering so they are fetched once and stay
    # VMEM-resident across grid steps.
    in_specs = [pl.BlockSpec((1, tb), lambda i: (0, i))]
    for p in packed_params:
        in_specs.append(_resident_spec(p.shape))
    out_spec = pl.BlockSpec((1, tb), lambda i: (0, i))        # fully-real, lane-dense

    single_buf = getattr(in_specs[1], "pipeline_mode", None) is not None
    vmem_limit = _vmem_limit_bytes(packed_params, tb, h_pad, t_pad, single_buf)

    out = pl.pallas_call(
        kernel,
        out_shape=jax.ShapeDtypeStruct((1, b_pad), jnp.float32),
        grid=(num_tiles,),
        in_specs=in_specs,
        out_specs=out_spec,
        compiler_params=pltpu.CompilerParams(
            dimension_semantics=("parallel",),
            vmem_limit_bytes=vmem_limit,
        ),
    )(t32, *packed_params)

    # .view(tactics_batch.size()[0]) — drop batch padding.
    return out.reshape(b_pad)[:batch]


# --------------------------------------------------------------------------- #
# Synthetic params + pure-JAX reference
# --------------------------------------------------------------------------- #
def init_params(key, num_tactics, hidden_size, num_layers):
    """Deterministic synthetic parameters matching DNNScorer's shapes (f32).

    Inner layers: [Linear(num_tactics, hidden)] + (num_layers-1)*[Linear(hidden, hidden)]
    Output layer: Linear(hidden, 1).  Weights stored (in_features, out_features).
    """
    params = []
    in_dim = num_tactics
    for _ in range(num_layers):
        key, kw, kb = jax.random.split(key, 3)
        w = jax.random.normal(kw, (in_dim, hidden_size), jnp.float32) * 0.1
        b = jax.random.normal(kb, (hidden_size,), jnp.float32) * 0.1
        params.append((w, b))
        in_dim = hidden_size
    key, kw, kb = jax.random.split(key, 3)
    w_out = jax.random.normal(kw, (hidden_size, 1), jnp.float32) * 0.1
    b_out = jax.random.normal(kb, (1,), jnp.float32) * 0.1
    params.append((w_out, b_out))
    return params


def reference_forward(tactics_batch, params, num_tactics, num_layers,
                      param_dtype=jnp.bfloat16):
    """Pure-JAX reference mirroring the kernel's bf16-weights / f32-accum math."""
    x = jax.nn.one_hot(tactics_batch, num_tactics, dtype=jnp.float32)
    for i in range(num_layers):
        w, b = params[i]
        x = jnp.dot(x.astype(param_dtype), w.astype(param_dtype),
                    preferred_element_type=jnp.float32) + b.astype(jnp.float32)
        x = jnp.maximum(x, 0.0)
    w, b = params[-1]
    x = jnp.dot(x.astype(param_dtype), w.astype(param_dtype),
                preferred_element_type=jnp.float32) + b.astype(jnp.float32)
    return x.reshape(tactics_batch.shape[0])


if __name__ == "__main__":
    # Small shapes consistent with the module.
    NUM_TACTICS = 32
    HIDDEN_SIZE = 32
    NUM_LAYERS = 3
    BATCH = 8

    key = jax.random.PRNGKey(0)
    key, k_t = jax.random.split(key)
    tactics_batch = jax.random.randint(k_t, (BATCH,), 0, NUM_TACTICS, dtype=jnp.int32)

    params = init_params(key, NUM_TACTICS, HIDDEN_SIZE, NUM_LAYERS)
    packed = pack_params(params, num_tactics=NUM_TACTICS, hidden_size=HIDDEN_SIZE,
                         num_layers=NUM_LAYERS, param_dtype=jnp.bfloat16)

    fwd = jax.jit(functools.partial(
        simplified_q_model_forward,
        num_tactics=NUM_TACTICS, hidden_size=HIDDEN_SIZE, num_layers=NUM_LAYERS))

    out = jax.block_until_ready(fwd(tactics_batch, packed))

    ref = reference_forward(tactics_batch, params, NUM_TACTICS, NUM_LAYERS)
    assert out.shape == (BATCH,), out.shape
    assert out.dtype == jnp.float32, out.dtype
    assert jnp.allclose(out, ref, atol=5e-3, rtol=5e-3), (out, ref)

    print("KERNEL_OK")
</pallas_src>

<mosaic_0001>
module attributes {stable_mosaic.version = 11 : i64} {
  func.func @kernel(%arg0: i32, %arg1: memref<1x8xi32, #tpu.memory_space<vmem>>, %arg2: memref<128x128xbf16, #tpu.memory_space<vmem>>, %arg3: memref<128x1xf32, #tpu.memory_space<vmem>>, %arg4: memref<128x128xbf16, #tpu.memory_space<vmem>>, %arg5: memref<128x1xf32, #tpu.memory_space<vmem>>, %arg6: memref<128x128xbf16, #tpu.memory_space<vmem>>, %arg7: memref<128x1xf32, #tpu.memory_space<vmem>>, %arg8: memref<8x128xbf16, #tpu.memory_space<vmem>>, %arg9: memref<1x1xf32, #tpu.memory_space<vmem>>, %arg10: memref<1x8xf32, #tpu.memory_space<vmem>>) attributes {dimension_semantics = [#tpu.dimension_semantics<parallel>], iteration_bounds = array<i64: 1>, scalar_prefetch = 0 : i64, scratch_operands = 0 : i64, tpu.core_type = #tpu.core_type<tc>, window_params = [{transform_indices = @transform_0, window_bounds = array<i64: 1, 8>}, {pipeline_mode = #tpu.pipeline_mode<synchronous>, transform_indices = @transform_1, window_bounds = array<i64: 128, 128>}, {pipeline_mode = #tpu.pipeline_mode<synchronous>, transform_indices = @transform_2, window_bounds = array<i64: 128, 1>}, {pipeline_mode = #tpu.pipeline_mode<synchronous>, transform_indices = @transform_3, window_bounds = array<i64: 128, 128>}, {pipeline_mode = #tpu.pipeline_mode<synchronous>, transform_indices = @transform_4, window_bounds = array<i64: 128, 1>}, {pipeline_mode = #tpu.pipeline_mode<synchronous>, transform_indices = @transform_5, window_bounds = array<i64: 128, 128>}, {pipeline_mode = #tpu.pipeline_mode<synchronous>, transform_indices = @transform_6, window_bounds = array<i64: 128, 1>}, {pipeline_mode = #tpu.pipeline_mode<synchronous>, transform_indices = @transform_7, window_bounds = array<i64: 8, 128>}, {pipeline_mode = #tpu.pipeline_mode<synchronous>, transform_indices = @transform_8, window_bounds = array<i64: 1, 1>}, {transform_indices = @transform_9, window_bounds = array<i64: 1, 8>}]} {
    %c0 = arith.constant 0 : index
    %c0_0 = arith.constant 0 : index
    %0 = vector.load %arg1[%c0, %c0_0] : memref<1x8xi32, #tpu.memory_space<vmem>>, vector<1x8xi32>
    %1 = tpu.iota {dimensions = array<i32: 0>} : vector<128x8xi32>
    %2 = vector.broadcast %0 : vector<1x8xi32> to vector<128x8xi32>
    %3 = arith.cmpi eq, %1, %2 : vector<128x8xi32>
    %4 = arith.extui %3 : vector<128x8xi1> to vector<128x8xi32>
    %5 = arith.sitofp %4 : vector<128x8xi32> to vector<128x8xf32>
    %6 = arith.truncf %5 : vector<128x8xf32> to vector<128x8xbf16>
    %c0_1 = arith.constant 0 : index
    %c0_2 = arith.constant 0 : index
    %7 = vector.load %arg2[%c0_1, %c0_2] : memref<128x128xbf16, #tpu.memory_space<vmem>>, vector<128x128xbf16>
    %c0_3 = arith.constant 0 : index
    %c0_4 = arith.constant 0 : index
    %8 = vector.load %arg3[%c0_3, %c0_4] : memref<128x1xf32, #tpu.memory_space<vmem>>, vector<128x1xf32>
    %cst = arith.constant dense<0.000000e+00> : vector<128x8xf32>
    %9 = tpu.matmul %7, %6, %cst {dimension_numbers = #tpu.dot_dimension_numbers<[1], [0], [0], [1], [0, 0, 1, 1], [], []>} : vector<128x128xbf16>, vector<128x8xbf16>, vector<128x8xf32> -> vector<128x8xf32>
    %10 = vector.broadcast %8 : vector<128x1xf32> to vector<128x8xf32>
    %11 = arith.addf %9, %10 : vector<128x8xf32>
    %cst_5 = arith.constant 0.000000e+00 : f32
    %12 = vector.broadcast %cst_5 : f32 to vector<128x8xf32>
    %13 = arith.maximumf %11, %12 : vector<128x8xf32>
    %c0_6 = arith.constant 0 : index
    %c0_7 = arith.constant 0 : index
    %14 = vector.load %arg4[%c0_6, %c0_7] : memref<128x128xbf16, #tpu.memory_space<vmem>>, vector<128x128xbf16>
    %c0_8 = arith.constant 0 : index
    %c0_9 = arith.constant 0 : index
    %15 = vector.load %arg5[%c0_8, %c0_9] : memref<128x1xf32, #tpu.memory_space<vmem>>, vector<128x1xf32>
    %16 = arith.truncf %13 : vector<128x8xf32> to vector<128x8xbf16>
    %cst_10 = arith.constant dense<0.000000e+00> : vector<128x8xf32>
    %17 = tpu.matmul %14, %16, %cst_10 {dimension_numbers = #tpu.dot_dimension_numbers<[1], [0], [0], [1], [0, 0, 1, 1], [], []>} : vector<128x128xbf16>, vector<128x8xbf16>, vector<128x8xf32> -> vector<128x8xf32>
    %18 = vector.broadcast %15 : vector<128x1xf32> to vector<128x8xf32>
    %19 = arith.addf %17, %18 : vector<128x8xf32>
    %cst_11 = arith.constant 0.000000e+00 : f32
    %20 = vector.broadcast %cst_11 : f32 to vector<128x8xf32>
    %21 = arith.maximumf %19, %20 : vector<128x8xf32>
    %c0_12 = arith.constant 0 : index
    %c0_13 = arith.constant 0 : index
    %22 = vector.load %arg6[%c0_12, %c0_13] : memref<128x128xbf16, #tpu.memory_space<vmem>>, vector<128x128xbf16>
    %c0_14 = arith.constant 0 : index
    %c0_15 = arith.constant 0 : index
    %23 = vector.load %arg7[%c0_14, %c0_15] : memref<128x1xf32, #tpu.memory_space<vmem>>, vector<128x1xf32>
    %24 = arith.truncf %21 : vector<128x8xf32> to vector<128x8xbf16>
    %cst_16 = arith.constant dense<0.000000e+00> : vector<128x8xf32>
    %25 = tpu.matmul %22, %24, %cst_16 {dimension_numbers = #tpu.dot_dimension_numbers<[1], [0], [0], [1], [0, 0, 1, 1], [], []>} : vector<128x128xbf16>, vector<128x8xbf16>, vector<128x8xf32> -> vector<128x8xf32>
    %26 = vector.broadcast %23 : vector<128x1xf32> to vector<128x8xf32>
    %27 = arith.addf %25, %26 : vector<128x8xf32>
    %cst_17 = arith.constant 0.000000e+00 : f32
    %28 = vector.broadcast %cst_17 : f32 to vector<128x8xf32>
    %29 = arith.maximumf %27, %28 : vector<128x8xf32>
    %c0_18 = arith.constant 0 : index
    %c0_19 = arith.constant 0 : index
    %30 = vector.load %arg8[%c0_18, %c0_19] : memref<8x128xbf16, #tpu.memory_space<vmem>>, vector<8x128xbf16>
    %c0_20 = arith.constant 0 : index
    %c0_21 = arith.constant 0 : index
    %31 = vector.load %arg9[%c0_20, %c0_21] : memref<1x1xf32, #tpu.memory_space<vmem>>, vector<1x1xf32>
    %32 = arith.truncf %29 : vector<128x8xf32> to vector<128x8xbf16>
    %cst_22 = arith.constant dense<0.000000e+00> : vector<8x8xf32>
    %33 = tpu.matmul %30, %32, %cst_22 {dimension_numbers = #tpu.dot_dimension_numbers<[1], [0], [0], [1], [0, 0, 1, 1], [], []>} : vector<8x128xbf16>, vector<128x8xbf16>, vector<8x8xf32> -> vector<8x8xf32>
    %34 = vector.extract_strided_slice %33 {offsets = [0, 0], sizes = [1, 8], strides = [1, 1]} : vector<8x8xf32> to vector<1x8xf32>
    %35 = vector.broadcast %31 : vector<1x1xf32> to vector<1x8xf32>
    %36 = arith.addf %34, %35 : vector<1x8xf32>
    %c0_23 = arith.constant 0 : index
    %c0_24 = arith.constant 0 : index
    %37 = vector.load %arg10[%c0_23, %c0_24] : memref<1x8xf32, #tpu.memory_space<vmem>>, vector<1x8xf32>
    tpu.vector_store %arg10[%c0_23, %c0_24], %36 {strides = array<i32>} : memref<1x8xf32, #tpu.memory_space<vmem>>, vector<1x8xf32>,
    return
  }
  func.func @transform_0(%arg0: i32) -> (i32, i32) {
    %c0_i32 = arith.constant 0 : i32
    %c0_i32_0 = arith.constant 0 : i32
    return %c0_i32, %arg0 : i32, i32
  }
  func.func @transform_1(%arg0: i32) -> (i32, i32) {
    %c0_i32 = arith.constant 0 : i32
    %c0_i32_0 = arith.constant 0 : i32
    %c0_i32_1 = arith.constant 0 : i32
    return %c0_i32, %c0_i32_0 : i32, i32
  }
  func.func @transform_2(%arg0: i32) -> (i32, i32) {
    %c0_i32 = arith.constant 0 : i32
    %c0_i32_0 = arith.constant 0 : i32
    %c0_i32_1 = arith.constant 0 : i32
    return %c0_i32, %c0_i32_0 : i32, i32
  }
  func.func @transform_3(%arg0: i32) -> (i32, i32) {
    %c0_i32 = arith.constant 0 : i32
    %c0_i32_0 = arith.constant 0 : i32
    %c0_i32_1 = arith.constant 0 : i32
    return %c0_i32, %c0_i32_0 : i32, i32
  }
  func.func @transform_4(%arg0: i32) -> (i32, i32) {
    %c0_i32 = arith.constant 0 : i32
    %c0_i32_0 = arith.constant 0 : i32
    %c0_i32_1 = arith.constant 0 : i32
    return %c0_i32, %c0_i32_0 : i32, i32
  }
  func.func @transform_5(%arg0: i32) -> (i32, i32) {
    %c0_i32 = arith.constant 0 : i32
    %c0_i32_0 = arith.constant 0 : i32
    %c0_i32_1 = arith.constant 0 : i32
    return %c0_i32, %c0_i32_0 : i32, i32
  }
  func.func @transform_6(%arg0: i32) -> (i32, i32) {
    %c0_i32 = arith.constant 0 : i32
    %c0_i32_0 = arith.constant 0 : i32
    %c0_i32_1 = arith.constant 0 : i32
    return %c0_i32, %c0_i32_0 : i32, i32
  }
  func.func @transform_7(%arg0: i32) -> (i32, i32) {
    %c0_i32 = arith.constant 0 : i32
    %c0_i32_0 = arith.constant 0 : i32
    %c0_i32_1 = arith.constant 0 : i32
    return %c0_i32, %c0_i32_0 : i32, i32
  }
  func.func @transform_8(%arg0: i32) -> (i32, i32) {
    %c0_i32 = arith.constant 0 : i32
    %c0_i32_0 = arith.constant 0 : i32
    %c0_i32_1 = arith.constant 0 : i32
    return %c0_i32, %c0_i32_0 : i32, i32
  }
  func.func @transform_9(%arg0: i32) -> (i32, i32) {
    %c0_i32 = arith.constant 0 : i32
    %c0_i32_0 = arith.constant 0 : i32
    return %c0_i32, %arg0 : i32, i32
  }
}

</mosaic_0001>

<bundles_post_ra>
// kernel: simplified_q_model_forward.1
= control target key start
LH: loop header
LB: loop body
LE: loop exit
PB: predicated region body
PF: predicated region fallthrough
CT: control target
= control target key end

     0   :  { %s1712_s0 = inlined_call_operand.vmem [shape: s32[1,8], index: 0, kind: input, shape index: {}]   ;;  %s1713_s1 = inlined_call_operand.vmem [shape: bf16[128,128], index: 1, kind: input, shape index: {}]   ;;  %s1714_s2 = inlined_call_operand.vmem [shape: f32[128,1], index: 2, kind: input, shape index: {}]   ;;  %s1715_s3 = inlined_call_operand.vmem [shape: bf16[128,128], index: 3, kind: input, shape index: {}]   ;;  %s1716_s4 = inlined_call_operand.vmem [shape: f32[128,1], index: 4, kind: input, shape index: {}]   ;;  %s1717_s5 = inlined_call_operand.vmem [shape: bf16[128,128], index: 5, kind: input, shape index: {}]   ;;  %s1718_s6 = inlined_call_operand.vmem [shape: f32[128,1], index: 6, kind: input, shape index: {}]   ;;  %s1719_s7 = inlined_call_operand.vmem [shape: bf16[8,128], index: 7, kind: input, shape index: {}]   ;;  %s1720_s8 = inlined_call_operand.<no memory space> [shape: f32[1,1], index: 8, kind: input, shape index: {}]   ;;  %s1721_s9 = inlined_call_operand.hbm [shape: f32[1,8], index: 9, kind: output, shape index: {}]  }
   0x1   :  { %v14_v0 = vstv %s1720_s8 }
   0x2   :  { %15 = vst [vmem:[#allocation2] sm:$0x1] %v14_v0 }
   0x3   :  { %v37_v1 = vlaneseq  ;;  %v130_v2 = vld [vmem:[%s1714_s2] sm:$0xff]  ;;  %v1310_v4 = vmov 0   ;;  %v132_v5 = vld [vmem:[%s1714_s2 + $0x10] sm:$0xff]  ;;  %v131_v7 = vld [vmem:[%s1714_s2 + $0x8] sm:$0xff]  ;;  %v1311_v16 = vmov 1.0|1.0  }
   0x4   :  { %v1374_v3 = vld [vmem:[%s1712_s0] ss:$0 sm:$0xff]  ;;  %1260 = vset.pattern.permute.xlu0 %v1310_v4  ;;  %1261 = vset.pattern.permute.xlu1 %v1310_v4  ;;  %v133_v8 = vld [vmem:[%s1714_s2 + $0x18] sm:$0xff]  ;;  %v135_v20 = vld [vmem:[%s1714_s2 + $0x28] sm:$0xff] }
   0x5   :  { %v1379_v6 = vshrl.u32 %v37_v1, 7  ;;  %148 = vperm.xlu0 %1260, %v130_v2   ;;  %158 = vperm.xlu1 %1261, %v132_v5   ;;  %v1262_v9 = vld [vmem:[%s1713_s1] sm:$0xff]   ;;  %v136_v23 = vld [vmem:[%s1714_s2 + $0x30] sm:$0xff]  ;;  %v137_v25 = vld [vmem:[%s1714_s2 + $0x38] sm:$0xff] }
   0x6   :  { %1155 = vmatprep.mubr.bf16.mxu0 %v1262_v9  ;;  %v134_v15 = vld [vmem:[%s1714_s2 + $0x20] sm:$0xff]  ;;  %v139_v30 = vld [vmem:[%s1714_s2 + $0x48] sm:$0xff]  ;;  %v140_v32 = vld [vmem:[%s1714_s2 + $0x50] sm:$0xff] }
   0x7   :  { %v39_v10 = vadd.s32 8, %v1379_v6  ;;  %vm58_vm0 = vcmp.eq.s32.totalorder %v1379_v6, %v1374_v3  ;;  %v40_v11 = vadd.s32 16, %v1379_v6  ;;  %v41_v12 = vadd.s32 24, %v1379_v6  ;;  %v138_v28 = vld [vmem:[%s1714_s2 + $0x40] sm:$0xff]  ;;  %v141_v35 = vld [vmem:[%s1714_s2 + $0x58] sm:$0xff]  ;;  %v143_v40 = vld [vmem:[%s1714_s2 + $0x68] sm:$0xff] }
   0x8   :  { %v42_v13 = vadd.s32 32, %v1379_v6  ;;  %v43_v14 = vadd.s32 40, %v1379_v6  ;;  %v44_v18 = vadd.s32 48, %v1379_v6  ;;  %v45_v19 = vadd.s32 56, %v1379_v6  ;;  %v142_v39 = vld [vmem:[%s1714_s2 + $0x60] sm:$0xff]  ;;  %v144_v41 = vld [vmem:[%s1714_s2 + $0x70] sm:$0xff] }
   0x9   :  { %vm59_vm1 = vcmp.eq.s32.totalorder %v39_v10, %v1374_v3  ;;  %vm60_vm2 = vcmp.eq.s32.totalorder %v40_v11, %v1374_v3  ;;  %vm61_vm3 = vcmp.eq.s32.totalorder %v41_v12, %v1374_v3  ;;  %153 = vperm.xlu0 %1260, %v131_v7   ;;  %163 = vperm.xlu1 %1261, %v133_v8   ;;  %v46_v22 = vadd.s32 64, %v1379_v6  ;;  %v145_v43 = vld [vmem:[%s1714_s2 + $0x78] sm:$0xff]  ;;  %v403_v44 = vld [vmem:[%s1716_s4] sm:$0xff]  ;;  %v404_v45 = vld [vmem:[%s1716_s4 + $0x8] sm:$0xff] }
   0xa   :  { %vm1050_vm4 = vmpackc.low %vm59_vm1, %vm58_vm0  ;;  %vm62_vm6 = vcmp.eq.s32.totalorder %v42_v13, %v1374_v3  ;;  %vm63_vm7 = vcmp.eq.s32.totalorder %v43_v14, %v1374_v3  ;;  %vm64_vm9 = vcmp.eq.s32.totalorder %v44_v18, %v1374_v3  ;;  %vm65_vm10 = vcmp.eq.s32.totalorder %v45_v19, %v1374_v3  ;;  %v405_v46 = vld [vmem:[%s1716_s4 + $0x10] sm:$0xff]  ;;  %v1263_v47 = vld [vmem:[%s1713_s1 + $0x8] sm:$0xff]  }
   0xb   :  { %1139 = vmatprep.subr.msk.bf16.mxu0 %vm1050_vm4, %v1311_v16  ;;  %vm1404_vm5 = vmpackc.low %vm61_vm3, %vm60_vm2  ;;  %v47_v24 = vadd.s32 72, %v1379_v6  ;;  %v48_v27 = vadd.s32 80, %v1379_v6  ;;  %vm66_vm12 = vcmp.eq.s32.totalorder %v46_v22, %v1374_v3  ;;  %v49_v29 = vadd.s32 88, %v1379_v6  ;;  %v406_v48 = vld [vmem:[%s1716_s4 + $0x18] sm:$0xff]  ;;  %v1264_v49 = vld [vmem:[%s1713_s1 + $0x10] sm:$0xff]  }
   0xc   :  { %1140 = vmatpush3.bf16.msk.msra.mxu0 %vm1050_vm4, %v1311_v16  ;;  %vm1419_vm8 = vmpackc.low %vm63_vm7, %vm62_vm6  ;;  %v50_v33 = vadd.s32 96, %v1379_v6  ;;  %v51_v34 = vadd.s32 104, %v1379_v6  ;;  %v52_v36 = vadd.s32 112, %v1379_v6  ;;  %v53_v37 = vadd.s32 120, %v1379_v6  ;;  %v407_v50 = vld [vmem:[%s1716_s4 + $0x20] sm:$0xff] }
   0xd   :  { %1141 = vmatprep.subr.msk.bf16.mxu0 %vm1404_vm5, %v1311_v16  ;;  %168 = vperm.xlu0 %1260, %v134_v15   ;;  %vm1439_vm11 = vmpackc.low %vm65_vm10, %vm64_vm9  ;;  %vm67_vm13 = vcmp.eq.s32.totalorder %v47_v24, %v1374_v3  ;;  %vm68_vm15 = vcmp.eq.s32.totalorder %v48_v27, %v1374_v3  ;;  %vm69_vm0 = vcmp.eq.s32.totalorder %v49_v29, %v1374_v3 }
   0xe   :  { %173 = vperm.xlu1 %1261, %v135_v20   ;;  %vm1459_vm14 = vmpackc.low %vm67_vm13, %vm66_vm12  ;;  %vm70_vm2 = vcmp.eq.s32.totalorder %v50_v33, %v1374_v3  ;;  %vm71_vm3 = vcmp.eq.s32.totalorder %v51_v34, %v1374_v3  ;;  %vm72_vm4 = vcmp.eq.s32.totalorder %v52_v36, %v1374_v3 }
   0xf   :  { %vm1481_vm1 = vmpackc.low %vm69_vm0, %vm68_vm15 }
  0x10   :  { %1142 = vmatpush3.bf16.msk.msra.mxu0 %vm1404_vm5, %v1311_v16  ;;  %vm73_vm5 = vcmp.eq.s32.totalorder %v53_v37, %v1374_v3  ;;  %vm1062_vm6 = vmpackc.low %vm71_vm3, %vm70_vm2 }
  0x11   :  { %1143 = vmatprep.subr.msk.bf16.mxu0 %vm1419_vm8, %v1311_v16  ;;  %178 = vperm.xlu0 %1260, %v136_v23   ;;  %vm1504_vm7 = vmpackc.low %vm73_vm5, %vm72_vm4 }
  0x12   :  { %183 = vperm.xlu1 %1261, %v137_v25  }
  0x14   :  { %1144 = vmatpush3.bf16.msk.msra.mxu0 %vm1419_vm8, %v1311_v16 }
  0x15   :  { %1145 = vmatprep.subr.msk.bf16.mxu0 %vm1439_vm11, %v1311_v16  ;;  %188 = vperm.xlu0 %1260, %v138_v28  }
  0x16   :  { %193 = vperm.xlu1 %1261, %v139_v30  }
  0x18   :  { %1146 = vmatpush3.bf16.msk.msra.mxu0 %vm1439_vm11, %v1311_v16 }
  0x19   :  { %1147 = vmatprep.subr.msk.bf16.mxu0 %vm1459_vm14, %v1311_v16  ;;  %198 = vperm.xlu0 %1260, %v140_v32  }
  0x1a   :  { %203 = vperm.xlu1 %1261, %v141_v35  }
  0x1c   :  { %1148 = vmatpush3.bf16.msk.msra.mxu0 %vm1459_vm14, %v1311_v16 }
  0x1d   :  { %1149 = vmatprep.subr.msk.bf16.mxu0 %vm1481_vm1, %v1311_v16  ;;  %208 = vperm.xlu0 %1260, %v142_v39  }
  0x1e   :  { %213 = vperm.xlu1 %1261, %v143_v40  }
  0x20   :  { %1150 = vmatpush3.bf16.msk.msra.mxu0 %vm1481_vm1, %v1311_v16 }
  0x21   :  { %1151 = vmatprep.subr.msk.bf16.mxu0 %vm1062_vm6, %v1311_v16  ;;  %218 = vperm.xlu0 %1260, %v144_v41  }
  0x22   :  { %223 = vperm.xlu1 %1261, %v145_v43  }
  0x24   :  { %1152 = vmatpush3.bf16.msk.msra.mxu0 %vm1062_vm6, %v1311_v16 }
  0x25   :  { %1153 = vmatprep.subr.msk.bf16.mxu0 %vm1504_vm7, %v1311_v16  ;;  %429 = vperm.xlu0 %1260, %v403_v44  }
  0x26   :  { %434 = vperm.xlu1 %1261, %v404_v45  }
  0x28   :  { %1154 = vmatpush3.bf16.msk.msra.mxu0 %vm1504_vm7, %v1311_v16 }
  0x29   :  { %439 = vperm.xlu0 %1260, %v405_v46  }
  0x2a   :  { %444 = vperm.xlu1 %1261, %v406_v48  }
  0x2b   :  { %16 = vsyncpa [#allocation4], 0  ;;  %1156 = vmatmul.mubr.bf16.vlgmr.msra.gmra.mrb[0].mxu0 %v1263_v47  ;;  %v408_v51 = vld [vmem:[%s1716_s4 + $0x28] sm:$0xff]  ;;  %v409_v52 = vld [vmem:[%s1716_s4 + $0x30] sm:$0xff]  ;;  %vm1313_vm8 = vmmov 0   ;;  %s1314_s27 = smov [#allocation3]  }
  0x2c   :  { %1159 = vmatprep.mubr.bf16.mxu0 %v1264_v49  ;;  %v1265_v53 = vld [vmem:[%s1713_s1 + $0x18] sm:$0xff]   ;;  %v1266_v55 = vld [vmem:[%s1713_s1 + $0x20] sm:$0xff]   ;;  %v412_v57 = vld [vmem:[%s1716_s4 + $0x48] sm:$0xff]  ;;  %s1017_s28 = sshll.u32 %s1314_s27, 4  ;;  %vm1009_vm9 = vcmask 57344   ;;  %s1018_s28 = int_to_ptr.vmem [resolvable:$true] %s1017_s28 }
  0x2d   :  { %449 = vperm.xlu0 %1260, %v407_v50   ;;  %v410_v54 = vld [vmem:[%s1716_s4 + $0x38] sm:$0xff]  ;;  %v411_v56 = vld [vmem:[%s1716_s4 + $0x40] sm:$0xff]  ;;  %v413_v58 = vld [vmem:[%s1716_s4 + $0x50] sm:$0xff]  ;;  %s1286_s29 = scalar_lea.vmem %s1018_s28, 16  ;;  %s1290_s30 = scalar_lea.vmem %s1018_s28, 32 }
  0x2e   :  { %454 = vperm.xlu1 %1261, %v408_v51   ;;  %v1267_v59 = vld [vmem:[%s1713_s1 + $0x28] sm:$0xff]   ;;  %v414_v60 = vld [vmem:[%s1716_s4 + $0x58] sm:$0xff]  ;;  %v1268_v61 = vld [vmem:[%s1713_s1 + $0x30] sm:$0xff]   ;;  %p1287_p0 = scmp.ne.s32.totalorder %s1018_s28, %s1286_s29  ;;  %p1291_p1 = scmp.lt.s32.totalorder %s1018_s28, %s1018_s28 }
  0x2f   :  { %v415_v62 = vld [vmem:[%s1716_s4 + $0x60] sm:$0xff]  ;;  %v416_v63 = vld [vmem:[%s1716_s4 + $0x68] sm:$0xff]  ;;  %v417_v0 = vld [vmem:[%s1716_s4 + $0x70] sm:$0xff]  ;;  %p1292_p2 = scmp.lt.s32.totalorder %s1290_s30, %s1286_s29 }
  0x30   :  { %v1269_v1 = vld [vmem:[%s1713_s1 + $0x38] sm:$0xff]   ;;  %v684_v3 = vld [vmem:[%s1718_s6] sm:$0xff]  ;;  %v685_v4 = vld [vmem:[%s1718_s6 + $0x8] sm:$0xff] }
  0x31   :  { %459 = vperm.xlu0 %1260, %v409_v52   ;;  %v418_v2 = vld [vmem:[%s1716_s4 + $0x78] sm:$0xff]  ;;  %v686_v5 = vld [vmem:[%s1718_s6 + $0x10] sm:$0xff]  ;;  %v688_v8 = vld [vmem:[%s1718_s6 + $0x20] sm:$0xff]  ;;  %p1293_p3 = por %p1292_p2, %p1291_p1 }
  0x32   :  { %464 = vperm.xlu1 %1261, %v410_v54   ;;  %v687_v7 = vld [vmem:[%s1718_s6 + $0x18] sm:$0xff]  ;;  %v689_v9 = vld [vmem:[%s1718_s6 + $0x28] sm:$0xff]  ;;  %v690_v10 = vld [vmem:[%s1718_s6 + $0x30] sm:$0xff] }
  0x33   :  { %1160 = vmatmul.mubr.bf16.gmra.mrb[4].mxu0 %v1265_v53  ;;  %v691_v11 = vld [vmem:[%s1718_s6 + $0x38] sm:$0xff]  ;;  %v692_v12 = vld [vmem:[%s1718_s6 + $0x40] sm:$0xff]  ;;  %v693_v13 = vld [vmem:[%s1718_s6 + $0x48] sm:$0xff]  ;;  %p1294_p4 = pnand %p1293_p3, %p1287_p0 }
  0x34   :  { %1163 = vmatprep.mubr.bf16.mxu0 %v1266_v55  ;;  %v694_v14 = vld [vmem:[%s1718_s6 + $0x50] sm:$0xff]  ;;  %v695_v15 = vld [vmem:[%s1718_s6 + $0x58] sm:$0xff]  ;;  %v696_v16 = vld [vmem:[%s1718_s6 + $0x60] sm:$0xff] }
  0x35   :  { %469 = vperm.xlu0 %1260, %v411_v56   ;;  %v697_v17 = vld [vmem:[%s1718_s6 + $0x68] sm:$0xff]  ;;  %v698_v18 = vld [vmem:[%s1718_s6 + $0x70] sm:$0xff]  ;;  %v699_v19 = vld [vmem:[%s1718_s6 + $0x78] sm:$0xff] }
  0x36   :  { %474 = vperm.xlu1 %1261, %v412_v57   ;;  %v950_v20 = vld [vmem:[#allocation2] sm:$0x1] }
  0x37   :  { %v1270_v21 = vld [vmem:[%s1715_s3] sm:$0xff]  }
  0x38   :  { %1187 = vmatprep.mubr.bf16.mxu1 %v1270_v21 }
  0x39   :  { %479 = vperm.xlu0 %1260, %v413_v58  }
  0x3a   :  { %484 = vperm.xlu1 %1261, %v414_v60  }
  0x3b   :  { %1164 = vmatmul.mubr.bf16.gmra.mrb[8].mxu0 %v1267_v59 }
  0x3c   :  { %1167 = vmatprep.mubr.bf16.mxu0 %v1268_v61 }
  0x3d   :  { %489 = vperm.xlu0 %1260, %v415_v62  }
  0x3e   :  { %494 = vperm.xlu1 %1261, %v416_v63  }
  0x41   :  { %499 = vperm.xlu0 %1260, %v417_v0  }
  0x42   :  { %504 = vperm.xlu1 %1261, %v418_v2  }
  0x43   :  { %1168 = vmatmul.mubr.bf16.gmra.mrb[12].mxu0 %v1269_v1 }
  0x45   :  { %710 = vperm.xlu0 %1260, %v684_v3  }
  0x46   :  { %715 = vperm.xlu1 %1261, %v685_v4  }
  0x49   :  { %720 = vperm.xlu0 %1260, %v686_v5  }
  0x4a   :  { %725 = vperm.xlu1 %1261, %v687_v7  }
  0x4d   :  { %730 = vperm.xlu0 %1260, %v688_v8  }
  0x4e   :  { %735 = vperm.xlu1 %1261, %v689_v9  }
  0x51   :  { %740 = vperm.xlu0 %1260, %v690_v10  }
  0x52   :  { %745 = vperm.xlu1 %1261, %v691_v11  }
  0x55   :  { %750 = vperm.xlu0 %1260, %v692_v12  }
  0x56   :  { %755 = vperm.xlu1 %1261, %v693_v13  }
  0x59   :  { %760 = vperm.xlu0 %1260, %v694_v14  }
  0x5a   :  { %765 = vperm.xlu1 %1261, %v695_v15  }
  0x5d   :  { %770 = vperm.xlu0 %1260, %v696_v16  }
  0x5e   :  { %775 = vperm.xlu1 %1261, %v697_v17  }
  0x61   :  { %780 = vperm.xlu0 %1260, %v698_v18  }
  0x62   :  { %785 = vperm.xlu1 %1261, %v699_v19  }
  0x65   :  { %1001 = vperm.xlu0 %1260, %v950_v20  }
  0x84   :  { %v149_v22 = vpop.permute.xlu0 %148  ;;  %v159_v23 = vpop.permute.xlu1 %158 }
  0x88   :  { %v154_v24 = vpop.permute.xlu0 %153  ;;  %v164_v25 = vpop.permute.xlu1 %163 }
  0x8c   :  { %v169_v26 = vpop.permute.xlu0 %168 }
  0x8d   :  { %v174_v27 = vpop.permute.xlu1 %173 }
  0x90   :  { %v179_v28 = vpop.permute.xlu0 %178 }
  0x91   :  { %v184_v32 = vpop.permute.xlu1 %183 }
  0x94   :  { %v189_v40 = vpop.permute.xlu0 %188 }
  0x95   :  { %v194_v44 = vpop.permute.xlu1 %193 }
  0x98   :  { %v199_v53 = vpop.permute.xlu0 %198 }
  0x99   :  { %v204_v57 = vpop.permute.xlu1 %203 }
  0x9c   :  { %v209_v1 = vpop.permute.xlu0 %208 }
  0x9d   :  { %v214_v7 = vpop.permute.xlu1 %213 }
  0xa0   :  { %v219_v14 = vpop.permute.xlu0 %218 }
  0xa1   :  { %v224_v19 = vpop.permute.xlu1 %223 }
  0xfe   :  { %v1157_v29 = vpop.f32.mrb[0].mxu0 }
  0xff   :  { %v317_v30 = vadd.f32 %v1157_v29, %v159_v23  ;;  %v308_v31 = vpop.f32.mrb[1].mxu0 }
 0x100   :  { %v309_v33 = vadd.f32 %v308_v31, %v149_v22  ;;  %v1158_v34 = vpop.f32.mrb[2].mxu0  ;;  %v1271_v31 = vld [vmem:[%s1715_s3 + $0x8] sm:$0xff]  }
 0x101   :  { %v320_v35 = vadd.f32 %v1158_v34, %v164_v25  ;;  %v311_v36 = vpop.f32.mrb[3].mxu0  ;;  %v373_v38 = vmax.f32 %v317_v30, 0.0  ;;  %v1274_v34 = vld [vmem:[%s1715_s3 + $0x20] sm:$0xff]  }
 0x102   :  { %v312_v37 = vadd.f32 %v311_v36, %v154_v24  ;;  %v371_v41 = vmax.f32 %v309_v33, 0.0  ;;  %v1273_v33 = vld [vmem:[%s1715_s3 + $0x18] sm:$0xff]   ;;  %v1276_v36 = vld [vmem:[%s1715_s3 + $0x30] sm:$0xff]  }
 0x103   :  { %v374_v39 = vmax.f32 %v320_v35, 0.0  ;;  %v1275_v35 = vld [vmem:[%s1715_s3 + $0x28] sm:$0xff]  }
 0x104   :  { %v372_v42 = vmax.f32 %v312_v37, 0.0  ;;  %v1277_v37 = vld [vmem:[%s1715_s3 + $0x38] sm:$0xff]  }
 0x105   :  { %v420_v43 = vpack.c.bf16 %v374_v39, %v373_v38  ;;  %v1278_v38 = vld [vmem:[%s1717_s5] sm:$0xff]   ;;  %v430_v39 = vpop.permute.xlu0 %429 }
 0x106   :  { %v1161_v45 = vpop.f32.mrb[4].mxu0  ;;  %v419_v46 = vpack.c.bf16 %v372_v42, %v371_v41  ;;  %1219 = vmatprep.mubr.bf16.mxu0 %v1278_v38 }
 0x107   :  { %v333_v47 = vadd.f32 %v1161_v45, %v179_v28  ;;  %v324_v48 = vpop.f32.mrb[5].mxu0 }
 0x108   :  { %v325_v49 = vadd.f32 %v324_v48, %v169_v26  ;;  %v1162_v50 = vpop.f32.mrb[6].mxu0  ;;  %1171 = vmatprep.subr.bf16.mxu1 %v419_v46 }
 0x109   :  { %v336_v51 = vadd.f32 %v1162_v50, %v184_v32  ;;  %v327_v52 = vpop.f32.mrb[7].mxu0  ;;  %1172 = vmatpush3.bf16.msra.mxu1 %v419_v46  ;;  %v377_v55 = vmax.f32 %v333_v47, 0.0  ;;  %v1272_v32 = vld [vmem:[%s1715_s3 + $0x10] sm:$0xff]   ;;  %v440_v41 = vpop.permute.xlu0 %439 }
 0x10a   :  { %v328_v54 = vadd.f32 %v327_v52, %v174_v27  ;;  %1173 = vmatprep.subr.bf16.mxu1 %v420_v43  ;;  %v375_v58 = vmax.f32 %v325_v49, 0.0 }
 0x10b   :  { %v378_v56 = vmax.f32 %v336_v51, 0.0 }
 0x10c   :  { %v376_v59 = vmax.f32 %v328_v54, 0.0 }
 0x10d   :  { %v422_v60 = vpack.c.bf16 %v378_v56, %v377_v55  ;;  %1174 = vmatpush3.bf16.msra.mxu1 %v420_v43  ;;  %v450_v43 = vpop.permute.xlu0 %449 }
 0x10e   :  { %v421_v61 = vpack.c.bf16 %v376_v59, %v375_v58  ;;  %v1165_v62 = vpop.f32.mrb[8].mxu0 }
 0x10f   :  { %v349_v63 = vadd.f32 %v1165_v62, %v199_v53  ;;  %v340_v0 = vpop.f32.mrb[9].mxu0 }
 0x110   :  { %v341_v2 = vadd.f32 %v340_v0, %v189_v40  ;;  %v1166_v3 = vpop.f32.mrb[10].mxu0  ;;  %1175 = vmatprep.subr.bf16.mxu1 %v421_v61  ;;  %v435_v40 = vpop.permute.xlu1 %434 }
 0x111   :  { %v352_v4 = vadd.f32 %v1166_v3, %v204_v57  ;;  %v343_v5 = vpop.f32.mrb[11].mxu0  ;;  %1176 = vmatpush3.bf16.msra.mxu1 %v421_v61  ;;  %v381_v9 = vmax.f32 %v349_v63, 0.0  ;;  %v460_v45 = vpop.permute.xlu0 %459 }
 0x112   :  { %v344_v8 = vadd.f32 %v343_v5, %v194_v44  ;;  %1177 = vmatprep.subr.bf16.mxu1 %v422_v60  ;;  %v379_v11 = vmax.f32 %v341_v2, 0.0 }
 0x113   :  { %v382_v10 = vmax.f32 %v352_v4, 0.0 }
 0x114   :  { %v380_v12 = vmax.f32 %v344_v8, 0.0  ;;  %v445_v42 = vpop.permute.xlu1 %444 }
 0x115   :  { %v424_v13 = vpack.c.bf16 %v382_v10, %v381_v9  ;;  %1178 = vmatpush3.bf16.msra.mxu1 %v422_v60  ;;  %v470_v57 = vpop.permute.xlu0 %469 }
 0x116   :  { %v423_v15 = vpack.c.bf16 %v380_v12, %v379_v11  ;;  %v1169_v16 = vpop.f32.mrb[12].mxu0 }
 0x117   :  { %v365_v17 = vadd.f32 %v1169_v16, %v219_v14  ;;  %v356_v18 = vpop.f32.mrb[13].mxu0 }
 0x118   :  { %v357_v20 = vadd.f32 %v356_v18, %v209_v1  ;;  %v1170_v21 = vpop.f32.mrb[14].mxu0  ;;  %1179 = vmatprep.subr.bf16.mxu1 %v423_v15  ;;  %v455_v44 = vpop.permute.xlu1 %454 }
 0x119   :  { %v368_v22 = vadd.f32 %v1170_v21, %v224_v19  ;;  %v359_v23 = vpop.f32.mrb[15].mxu0  ;;  %1180 = vmatpush3.bf16.msra.mxu1 %v423_v15  ;;  %v385_v25 = vmax.f32 %v365_v17, 0.0 }
 0x11a   :  { %v360_v24 = vadd.f32 %v359_v23, %v214_v7  ;;  %1181 = vmatprep.subr.bf16.mxu1 %v424_v13  ;;  %v383_v27 = vmax.f32 %v357_v20, 0.0  ;;  %v480_v7 = vpop.permute.xlu0 %479 }
 0x11b   :  { %v386_v26 = vmax.f32 %v368_v22, 0.0 }
 0x11c   :  { %v384_v28 = vmax.f32 %v360_v24, 0.0  ;;  %v465_v49 = vpop.permute.xlu1 %464 }
 0x11d   :  { %v426_v29 = vpack.c.bf16 %v386_v26, %v385_v25  ;;  %1182 = vmatpush3.bf16.msra.mxu1 %v424_v13 }
 0x11e   :  { %v425_v30 = vpack.c.bf16 %v384_v28, %v383_v27  ;;  %v490_v19 = vpop.permute.xlu0 %489 }
 0x120   :  { %1183 = vmatprep.subr.bf16.mxu1 %v425_v30  ;;  %v475_v61 = vpop.permute.xlu1 %474 }
 0x121   :  { %1184 = vmatpush3.bf16.msra.mxu1 %v425_v30 }
 0x122   :  { %1185 = vmatprep.subr.bf16.mxu1 %v426_v29 }
 0x124   :  { %v485_v11 = vpop.permute.xlu1 %484 }
 0x125   :  { %1186 = vmatpush3.bf16.msra.mxu1 %v426_v29 }
 0x128   :  { %1188 = vmatmul.mubr.bf16.vlgmr.msra.gmra.mrb[0].mxu1 %v1271_v31  ;;  %v495_v24 = vpop.permute.xlu1 %494  ;;  %v500_v31 = vpop.permute.xlu0 %499 }
 0x129   :  { %1191 = vmatprep.mubr.bf16.mxu1 %v1272_v32 }
 0x130   :  { %1192 = vmatmul.mubr.bf16.gmra.mrb[4].mxu1 %v1273_v33 }
 0x131   :  { %1195 = vmatprep.mubr.bf16.mxu1 %v1274_v34 }
 0x138   :  { %1196 = vmatmul.mubr.bf16.gmra.mrb[8].mxu1 %v1275_v35 }
 0x139   :  { %1199 = vmatprep.mubr.bf16.mxu1 %v1276_v36  ;;  %v505_v36 = vpop.permute.xlu1 %504 }
 0x140   :  { %1200 = vmatmul.mubr.bf16.gmra.mrb[12].mxu1 %v1277_v37 }
 0x1fb   :  { %v1189_v46 = vpop.f32.mrb[0].mxu1 }
 0x1fc   :  { %v598_v47 = vadd.f32 %v1189_v46, %v440_v41  ;;  %v589_v48 = vpop.f32.mrb[1].mxu1 }
 0x1fd   :  { %v590_v50 = vadd.f32 %v589_v48, %v430_v39  ;;  %v1190_v51 = vpop.f32.mrb[2].mxu1  ;;  %v1279_v48 = vld [vmem:[%s1717_s5 + $0x8] sm:$0xff]  }
 0x1fe   :  { %v601_v52 = vadd.f32 %v1190_v51, %v445_v42  ;;  %v592_v53 = vpop.f32.mrb[3].mxu1  ;;  %v654_v55 = vmax.f32 %v598_v47, 0.0  ;;  %v1282_v51 = vld [vmem:[%s1717_s5 + $0x20] sm:$0xff]  }
 0x1ff   :  { %v593_v54 = vadd.f32 %v592_v53, %v435_v40  ;;  %v652_v58 = vmax.f32 %v590_v50, 0.0  ;;  %v1281_v50 = vld [vmem:[%s1717_s5 + $0x18] sm:$0xff]   ;;  %v1284_v53 = vld [vmem:[%s1717_s5 + $0x30] sm:$0xff]  }
 0x200   :  { %v655_v56 = vmax.f32 %v601_v52, 0.0  ;;  %v1283_v52 = vld [vmem:[%s1717_s5 + $0x28] sm:$0xff]  }
 0x201   :  { %v653_v59 = vmax.f32 %v593_v54, 0.0  ;;  %v1285_v54 = vld [vmem:[%s1717_s5 + $0x38] sm:$0xff]  }
 0x202   :  { %v701_v60 = vpack.c.bf16 %v655_v56, %v654_v55  ;;  %v1312_v55 = vmov 0.0   ;;  %v711_v56 = vpop.permute.xlu0 %710 }
 0x203   :  { %v700_v62 = vpack.c.bf16 %v653_v59, %v652_v58  ;;  %v1193_v63 = vpop.f32.mrb[4].mxu1  ;;  %1235 = vmatprep.subr.bf16.mxu1 %v1312_v55  ;;  %1251 = vmatprep.mubr.msk.bf16.mxu1 %vm1313_vm8, %v1312_v55 }
 0x204   :  { %v614_v0 = vadd.f32 %v1193_v63, %v460_v45  ;;  %v605_v1 = vpop.f32.mrb[5].mxu1 }
 0x205   :  { %v606_v2 = vadd.f32 %v605_v1, %v450_v43  ;;  %v1194_v3 = vpop.f32.mrb[6].mxu1  ;;  %1203 = vmatprep.subr.bf16.mxu0 %v700_v62 }
 0x206   :  { %v617_v4 = vadd.f32 %v1194_v3, %v465_v49  ;;  %v608_v5 = vpop.f32.mrb[7].mxu1  ;;  %1204 = vmatpush3.bf16.msra.mxu0 %v700_v62  ;;  %v658_v9 = vmax.f32 %v614_v0, 0.0  ;;  %v1280_v49 = vld [vmem:[%s1717_s5 + $0x10] sm:$0xff]   ;;  %v721_v58 = vpop.permute.xlu0 %720 }
 0x207   :  { %v609_v8 = vadd.f32 %v608_v5, %v455_v44  ;;  %1205 = vmatprep.subr.bf16.mxu0 %v701_v60  ;;  %v656_v12 = vmax.f32 %v606_v2, 0.0 }
 0x208   :  { %v659_v10 = vmax.f32 %v617_v4, 0.0 }
 0x209   :  { %v657_v13 = vmax.f32 %v609_v8, 0.0 }
 0x20a   :  { %v703_v14 = vpack.c.bf16 %v659_v10, %v658_v9  ;;  %1206 = vmatpush3.bf16.msra.mxu0 %v701_v60  ;;  %v731_v60 = vpop.permute.xlu0 %730 }
 0x20b   :  { %v702_v15 = vpack.c.bf16 %v657_v13, %v656_v12  ;;  %v1197_v16 = vpop.f32.mrb[8].mxu1 }
 0x20c   :  { %v630_v17 = vadd.f32 %v1197_v16, %v480_v7  ;;  %v621_v18 = vpop.f32.mrb[9].mxu1 }
 0x20d   :  { %v622_v20 = vadd.f32 %v621_v18, %v470_v57  ;;  %v1198_v21 = vpop.f32.mrb[10].mxu1  ;;  %1207 = vmatprep.subr.bf16.mxu0 %v702_v15  ;;  %v716_v57 = vpop.permute.xlu1 %715 }
 0x20e   :  { %v633_v22 = vadd.f32 %v1198_v21, %v485_v11  ;;  %v624_v23 = vpop.f32.mrb[11].mxu1  ;;  %1208 = vmatpush3.bf16.msra.mxu0 %v702_v15  ;;  %v662_v26 = vmax.f32 %v630_v17, 0.0  ;;  %v741_v62 = vpop.permute.xlu0 %740 }
 0x20f   :  { %v625_v25 = vadd.f32 %v624_v23, %v475_v61  ;;  %1209 = vmatprep.subr.bf16.mxu0 %v703_v14  ;;  %v660_v28 = vmax.f32 %v622_v20, 0.0 }
 0x210   :  { %v663_v27 = vmax.f32 %v633_v22, 0.0 }
 0x211   :  { %v661_v29 = vmax.f32 %v625_v25, 0.0  ;;  %v726_v59 = vpop.permute.xlu1 %725 }
 0x212   :  { %v705_v30 = vpack.c.bf16 %v663_v27, %v662_v26  ;;  %1210 = vmatpush3.bf16.msra.mxu0 %v703_v14  ;;  %v751_v11 = vpop.permute.xlu0 %750 }
 0x213   :  { %v704_v32 = vpack.c.bf16 %v661_v29, %v660_v28  ;;  %v1201_v33 = vpop.f32.mrb[12].mxu1 }
 0x214   :  { %v646_v34 = vadd.f32 %v1201_v33, %v500_v31  ;;  %v637_v35 = vpop.f32.mrb[13].mxu1 }
 0x215   :  { %v638_v37 = vadd.f32 %v637_v35, %v490_v19  ;;  %v1202_v38 = vpop.f32.mrb[14].mxu1  ;;  %1211 = vmatprep.subr.bf16.mxu0 %v704_v32  ;;  %v736_v61 = vpop.permute.xlu1 %735 }
 0x216   :  { %v649_v39 = vadd.f32 %v1202_v38, %v505_v36  ;;  %v640_v40 = vpop.f32.mrb[15].mxu1  ;;  %1212 = vmatpush3.bf16.msra.mxu0 %v704_v32  ;;  %v666_v42 = vmax.f32 %v646_v34, 0.0 }
 0x217   :  { %v641_v41 = vadd.f32 %v640_v40, %v495_v24  ;;  %1213 = vmatprep.subr.bf16.mxu0 %v705_v30  ;;  %v664_v44 = vmax.f32 %v638_v37, 0.0  ;;  %v761_v24 = vpop.permute.xlu0 %760 }
 0x218   :  { %v667_v43 = vmax.f32 %v649_v39, 0.0 }
 0x219   :  { %v665_v45 = vmax.f32 %v641_v41, 0.0  ;;  %v746_v2 = vpop.permute.xlu1 %745 }
 0x21a   :  { %v707_v46 = vpack.c.bf16 %v667_v43, %v666_v42  ;;  %1214 = vmatpush3.bf16.msra.mxu0 %v705_v30 }
 0x21b   :  { %v706_v47 = vpack.c.bf16 %v665_v45, %v664_v44  ;;  %v771_v36 = vpop.permute.xlu0 %770 }
 0x21d   :  { %1215 = vmatprep.subr.bf16.mxu0 %v706_v47  ;;  %v756_v15 = vpop.permute.xlu1 %755 }
 0x21e   :  { %1216 = vmatpush3.bf16.msra.mxu0 %v706_v47 }
 0x21f   :  { %1217 = vmatprep.subr.bf16.mxu0 %v707_v46 }
 0x221   :  { %v766_v28 = vpop.permute.xlu1 %765 }
 0x222   :  { %1218 = vmatpush3.bf16.msra.mxu0 %v707_v46 }
 0x225   :  { %1220 = vmatmul.mubr.bf16.vlgmr.msra.gmra.mrb[16].mxu0 %v1279_v48  ;;  %v776_v41 = vpop.permute.xlu1 %775  ;;  %v781_v48 = vpop.permute.xlu0 %780 }
 0x226   :  { %1223 = vmatprep.mubr.bf16.mxu0 %v1280_v49 }
 0x22d   :  { %1224 = vmatmul.mubr.bf16.gmra.mrb[20].mxu0 %v1281_v50 }
 0x22e   :  { %1227 = vmatprep.mubr.bf16.mxu0 %v1282_v51 }
 0x235   :  { %1228 = vmatmul.mubr.bf16.gmra.mrb[24].mxu0 %v1283_v52 }
 0x236   :  { %1231 = vmatprep.mubr.bf16.mxu0 %v1284_v53  ;;  %v786_v53 = vpop.permute.xlu1 %785 }
 0x23d   :  { %1232 = vmatmul.mubr.bf16.gmra.mrb[28].mxu0 %v1285_v54 }
 0x2f8   :  { %v1221_v63 = vpop.f32.mrb[16].mxu0 }
 0x2f9   :  { %v879_v0 = vadd.f32 %v1221_v63, %v721_v58  ;;  %v870_v1 = vpop.f32.mrb[17].mxu0 }
 0x2fa   :  { %v871_v3 = vadd.f32 %v870_v1, %v711_v56  ;;  %v1222_v4 = vpop.f32.mrb[18].mxu0 }
 0x2fb   :  { %v882_v5 = vadd.f32 %v1222_v4, %v726_v59  ;;  %v873_v7 = vpop.f32.mrb[19].mxu0  ;;  %v935_v9 = vmax.f32 %v879_v0, 0.0  ;;  %v1002_v4 = vpop.permute.xlu0 %1001 }
 0x2fc   :  { %v874_v8 = vadd.f32 %v873_v7, %v716_v57  ;;  %v933_v12 = vmax.f32 %v871_v3, 0.0  ;;  %v1006_v3 = vsub.s32 0, %v1379_v6 }
 0x2fd   :  { %v936_v10 = vmax.f32 %v882_v5, 0.0 }
 0x2fe   :  { %v934_v13 = vmax.f32 %v874_v8, 0.0  ;;  %v1007_v5 = vrot.slane %v1002_v4, %v1006_v3 }
 0x2ff   :  { %v952_v14 = vpack.c.bf16 %v936_v10, %v935_v9 }
 0x300   :  { %v951_v16 = vpack.c.bf16 %v934_v13, %v933_v12  ;;  %v1225_v17 = vpop.f32.mrb[20].mxu0 }
 0x301   :  { %v895_v18 = vadd.f32 %v1225_v17, %v741_v62  ;;  %v886_v19 = vpop.f32.mrb[21].mxu0 }
 0x302   :  { %v887_v20 = vadd.f32 %v886_v19, %v731_v60  ;;  %v1226_v21 = vpop.f32.mrb[22].mxu0  ;;  %1236 = vmatpush3.bf16.msra.mxu1 %v951_v16 }
 0x303   :  { %v898_v22 = vadd.f32 %v1226_v21, %v746_v2  ;;  %v889_v23 = vpop.f32.mrb[23].mxu0  ;;  %1237 = vmatprep.subr.bf16.mxu1 %v1312_v55  ;;  %v939_v26 = vmax.f32 %v895_v18, 0.0  ;;  %v949_v2 = vld [vmem:[%s1719_s7] sm:$0xf] }
 0x304   :  { %v890_v25 = vadd.f32 %v889_v23, %v736_v61  ;;  %v937_v29 = vmax.f32 %v887_v20, 0.0 }
 0x305   :  { %v940_v27 = vmax.f32 %v898_v22, 0.0 }
 0x306   :  { %v938_v30 = vmax.f32 %v890_v25, 0.0  ;;  %1238 = vmatpush3.bf16.msra.mxu1 %v952_v14 }
 0x307   :  { %v954_v31 = vpack.c.bf16 %v940_v27, %v939_v26  ;;  %1239 = vmatprep.subr.bf16.mxu1 %v1312_v55 }
 0x308   :  { %v953_v32 = vpack.c.bf16 %v938_v30, %v937_v29  ;;  %v1229_v33 = vpop.f32.mrb[24].mxu0 }
 0x309   :  { %v911_v34 = vadd.f32 %v1229_v33, %v761_v24  ;;  %v902_v35 = vpop.f32.mrb[25].mxu0 }
 0x30a   :  { %v903_v37 = vadd.f32 %v902_v35, %v751_v11  ;;  %v1230_v38 = vpop.f32.mrb[26].mxu0  ;;  %1240 = vmatpush3.bf16.msra.mxu1 %v953_v32 }
 0x30b   :  { %v914_v39 = vadd.f32 %v1230_v38, %v766_v28  ;;  %v905_v40 = vpop.f32.mrb[27].mxu0  ;;  %1241 = vmatprep.subr.bf16.mxu1 %v1312_v55  ;;  %v943_v43 = vmax.f32 %v911_v34, 0.0 }
 0x30c   :  { %v906_v42 = vadd.f32 %v905_v40, %v756_v15  ;;  %v941_v45 = vmax.f32 %v903_v37, 0.0 }
 0x30d   :  { %v944_v44 = vmax.f32 %v914_v39, 0.0 }
 0x30e   :  { %v942_v46 = vmax.f32 %v906_v42, 0.0  ;;  %1242 = vmatpush3.bf16.msra.mxu1 %v954_v31 }
 0x30f   :  { %v956_v47 = vpack.c.bf16 %v944_v44, %v943_v43  ;;  %1243 = vmatprep.subr.bf16.mxu1 %v1312_v55 }
 0x310   :  { %v955_v49 = vpack.c.bf16 %v942_v46, %v941_v45  ;;  %v1233_v50 = vpop.f32.mrb[28].mxu0 }
 0x311   :  { %v927_v51 = vadd.f32 %v1233_v50, %v781_v48  ;;  %v918_v52 = vpop.f32.mrb[29].mxu0 }
 0x312   :  { %v919_v54 = vadd.f32 %v918_v52, %v771_v36  ;;  %v1234_v56 = vpop.f32.mrb[30].mxu0  ;;  %1244 = vmatpush3.bf16.msra.mxu1 %v955_v49 }
 0x313   :  { %v930_v57 = vadd.f32 %v1234_v56, %v786_v53  ;;  %v921_v58 = vpop.f32.mrb[31].mxu0  ;;  %1245 = vmatprep.subr.bf16.mxu1 %v1312_v55  ;;  %v947_v60 = vmax.f32 %v927_v51, 0.0 }
 0x314   :  { %v922_v59 = vadd.f32 %v921_v58, %v776_v41  ;;  %v945_v62 = vmax.f32 %v919_v54, 0.0 }
 0x315   :  { %v948_v61 = vmax.f32 %v930_v57, 0.0 }
 0x316   :  { %v946_v63 = vmax.f32 %v922_v59, 0.0  ;;  %1246 = vmatpush3.bf16.msra.mxu1 %v956_v47 }
 0x317   :  { %v958_v0 = vpack.c.bf16 %v948_v61, %v947_v60  ;;  %1247 = vmatprep.subr.bf16.mxu1 %v1312_v55 }
 0x318   :  { %v957_v1 = vpack.c.bf16 %v946_v63, %v945_v62 }
 0x31a   :  { %1248 = vmatpush3.bf16.msra.mxu1 %v957_v1 }
 0x31b   :  { %1249 = vmatprep.subr.bf16.mxu1 %v1312_v55 }
 0x31e   :  { %1250 = vmatpush3.bf16.msra.mxu1 %v958_v0 }
 0x321   :  { %1252 = vmatmul.mubr.bf16.vlgmr.msra.gmra.mrb[16].mxu1 %v949_v2 }
 0x3f4   :  { %v993_v7 = vpop.f32.mrb[16].mxu1 }
 0x3f5   :  { %v1008_v8 = vadd.f32 %v1007_v5, %v993_v7  ;;  %v1253_v9 = vpop.f32.mrb[17].mxu1 }
 0x3f6   :  { %v996_v10 = vpop.f32.mrb[18].mxu1 }
 0x3f7   :  { %v1254_v11 = vpop.f32.mrb[19].mxu1  ;;  %1010 = vst.msk [vmem:[#allocation3] sm:$0x1] %vm1009_vm9, %v1008_v8 }
 0x3f8   :  { %1297 = shalt.err (!%p1294_p4)
}
 0x3f9   :  { %s1298_s11 = scalar_lea.hbm %s1721_s9, 16 }
 0x3fa   :  { %p1299_p5 = scmp.ne.s32.totalorder %s1721_s9, %s1298_s11  ;;  %p1302_p6 = scmp.lt.u32.totalorder %s1298_s11, %s1721_s9 }
 0x3fc   :  { %p1304_p7 = pnand %p1302_p6, %p1299_p5 }
 0x3fe   :  { %1307 = shalt.err (!%p1304_p7)
}
 0x3ff   :  { %1020 = dma.vmem_to_hbm [thread:$0]  %s1018_s28, 16, %s1721_s9, [#allocation4]  }
 0x400   :  { %1308 = dma.done.wait [#allocation4], 16  }
 0x401   :  { %1309 = vsyncadd [#allocation4], 4294967280 }
 0x402   :  { %1024 = vsyncpa [#allocation4], 1 }

</bundles_post_ra>
